<compile_context>
chip_gen: v5e
topology: v5e:2x2
jax: 0.10.0
libtpu: 0.0.40
codegen_flags: <defaults>
</compile_context>

<pallas_src>
import jax
import jax.numpy as jnp
from jax.experimental import pallas as pl
from jax.experimental.pallas import tpu as pltpu

NEG_INF = -10000000000.0  # -1e10, matches the PyTorch module


def critic_kernel(obs_ref, w1_ref, b1_ref, w2_ref, b2_ref, mask_ref, out_ref):
    # Hidden layer: [TB, in] @ [in, H] + b1, ReLU  (MXU matmul, f32 accumulate)
    h = jnp.dot(obs_ref[...], w1_ref[...], preferred_element_type=jnp.float32)
    h = jnp.maximum(h + b1_ref[...], 0.0)          # b1 is [1, H], broadcasts over rows
    # Output layer: [TB, H] @ [H, out] + b2
    q = jnp.dot(h, w2_ref[...], preferred_element_type=jnp.float32)
    q = q + b2_ref[...]                            # b2 is [1, out]
    # Action masking: single select instead of mul/sub/add chain.
    out_ref[...] = jnp.where(mask_ref[...] != 0.0, q, NEG_INF).astype(out_ref.dtype)


def critic_forward(obs, w1_t, b1, w2_t, b2, action_mask, *, tb=512):
    """obs: [B, in_dim], w1_t: [in_dim, H], b1: [H], w2_t: [H, out], b2: [out],
    action_mask: [B, out] with 0/1 entries. Returns masked q-values [B, out] f32."""
    B, in_dim = obs.shape
    hidden = w1_t.shape[1]
    out_dim = w2_t.shape[1]

    # Batch tile: never larger than the batch itself. When tiling (B > tb),
    # keep the tile a multiple of 8 sublanes; when B <= tb the block equals
    # the full batch extent, which is always a legal block shape.
    tb = min(tb, B)
    if tb < B:
        tb = max(8, (tb // 8) * 8)
    grid = (pl.cdiv(B, tb),)

    b1_2d = b1.reshape(1, hidden)
    b2_2d = b2.reshape(1, out_dim)

    return pl.pallas_call(
        critic_kernel,
        out_shape=jax.ShapeDtypeStruct((B, out_dim), jnp.float32),
        grid=grid,
        in_specs=[
            # Batch-tiled activations: indexed by grid step i.
            pl.BlockSpec((tb, in_dim), lambda i: (i, 0)),
            # Weights / biases: constant block index -> stay resident in VMEM,
            # not re-copied each grid step.
            pl.BlockSpec((in_dim, hidden), lambda i: (0, 0)),
            pl.BlockSpec((1, hidden), lambda i: (0, 0)),
            pl.BlockSpec((hidden, out_dim), lambda i: (0, 0)),
            pl.BlockSpec((1, out_dim), lambda i: (0, 0)),
            # Action mask: batch-tiled alongside obs.
            pl.BlockSpec((tb, out_dim), lambda i: (i, 0)),
        ],
        out_specs=pl.BlockSpec((tb, out_dim), lambda i: (i, 0)),
        compiler_params=pltpu.CompilerParams(
            # Batch tiles are independent -> shard across TCs on v7x;
            # harmless no-op on single-TC v5e/v6e.
            dimension_semantics=("parallel",)),
    )(obs, w1_t, b1_2d, w2_t, b2_2d, action_mask)


def orthogonal(key, rows, cols, dtype=jnp.float32):
    """Deterministic orthogonal init (mimics nn.init.orthogonal_, gain=1)."""
    n = max(rows, cols)
    m = min(rows, cols)
    a = jax.random.normal(key, (n, m), dtype)
    q, r = jnp.linalg.qr(a)
    q = q * jnp.sign(jnp.diag(r))[None, :]   # [n, m] with orthonormal columns
    if rows < cols:
        q = q.T
    return q.astype(dtype)                    # [rows, cols]


def _reference(obs, w1_t, b1, w2_t, b2, action_mask):
    h = jnp.maximum(obs @ w1_t + b1[None, :], 0.0)
    q = h @ w2_t + b2[None, :]
    return action_mask * q + (1.0 - action_mask) * NEG_INF


if __name__ == "__main__":
    # Small, module-consistent shapes: batch=8, in_dim=32, hidden=256, out=19
    B, IN_DIM, HIDDEN, OUT_DIM = 8, 32, 256, 19

    key = jax.random.PRNGKey(0)
    k_obs, k_mask, k_w1, k_b1, k_w2, k_b2, k_obs2, k_mask2 = jax.random.split(key, 8)

    # Parameters (PyTorch Linear weight is [out, in]; we keep the transposed
    # [in, out] form for the kernel's row-major matmul).
    w1 = orthogonal(k_w1, HIDDEN, IN_DIM)                      # [H, in]
    b1 = jax.random.uniform(k_b1, (HIDDEN,), jnp.float32, 0.0, 0.001)
    w2 = orthogonal(k_w2, OUT_DIM, HIDDEN)                     # [out, H]
    b2 = jax.random.uniform(k_b2, (OUT_DIM,), jnp.float32, 0.0, 0.001)
    w1_t = w1.T                                                # [in, H]
    w2_t = w2.T                                                # [H, out]

    # --- small-batch check (single block) ---
    obs = jax.random.normal(k_obs, (B, IN_DIM), jnp.float32)
    action_mask = jax.random.bernoulli(k_mask, 0.7, (B, OUT_DIM)).astype(jnp.float32)

    q = critic_forward(obs, w1_t, b1, w2_t, b2, action_mask)
    q = jax.block_until_ready(q)

    q_ref = _reference(obs, w1_t, b1, w2_t, b2, action_mask)
    assert q.shape == (B, OUT_DIM)
    assert jnp.allclose(q, q_ref, rtol=1e-5, atol=1e-5), "mismatch vs reference (B=8)"

    # --- multi-tile check (exercises batch tiling + resident weights) ---
    B2 = 384   # not a multiple of the tile -> also exercises the partial last block
    obs2 = jax.random.normal(k_obs2, (B2, IN_DIM), jnp.float32)
    mask2 = jax.random.bernoulli(k_mask2, 0.7, (B2, OUT_DIM)).astype(jnp.float32)

    q2 = critic_forward(obs2, w1_t, b1, w2_t, b2, mask2, tb=128)
    q2 = jax.block_until_ready(q2)

    q2_ref = _reference(obs2, w1_t, b1, w2_t, b2, mask2)
    assert q2.shape == (B2, OUT_DIM)
    assert jnp.allclose(q2, q2_ref, rtol=1e-5, atol=1e-5), "mismatch vs reference (B=384)"

    print("KERNEL_OK")
</pallas_src>

<mosaic_0001>
module attributes {stable_mosaic.version = 11 : i64} {
  func.func @critic_kernel(%arg0: i32, %arg1: memref<8x32xf32, #tpu.memory_space<vmem>>, %arg2: memref<32x256xf32, #tpu.memory_space<vmem>>, %arg3: memref<1x256xf32, #tpu.memory_space<vmem>>, %arg4: memref<256x19xf32, #tpu.memory_space<vmem>>, %arg5: memref<1x19xf32, #tpu.memory_space<vmem>>, %arg6: memref<8x19xf32, #tpu.memory_space<vmem>>, %arg7: memref<8x19xf32, #tpu.memory_space<vmem>>) attributes {dimension_semantics = [#tpu.dimension_semantics<parallel>], iteration_bounds = array<i64: 1>, scalar_prefetch = 0 : i64, scratch_operands = 0 : i64, tpu.core_type = #tpu.core_type<tc>, window_params = [{transform_indices = @transform_0, window_bounds = array<i64: 8, 32>}, {pipeline_mode = #tpu.pipeline_mode<synchronous>, transform_indices = @transform_1, window_bounds = array<i64: 32, 256>}, {pipeline_mode = #tpu.pipeline_mode<synchronous>, transform_indices = @transform_2, window_bounds = array<i64: 1, 256>}, {pipeline_mode = #tpu.pipeline_mode<synchronous>, transform_indices = @transform_3, window_bounds = array<i64: 256, 19>}, {pipeline_mode = #tpu.pipeline_mode<synchronous>, transform_indices = @transform_4, window_bounds = array<i64: 1, 19>}, {transform_indices = @transform_5, window_bounds = array<i64: 8, 19>}, {transform_indices = @transform_6, window_bounds = array<i64: 8, 19>}]} {
    %c0 = arith.constant 0 : index
    %c0_0 = arith.constant 0 : index
    %0 = vector.load %arg1[%c0, %c0_0] : memref<8x32xf32, #tpu.memory_space<vmem>>, vector<8x32xf32>
    %c0_1 = arith.constant 0 : index
    %c0_2 = arith.constant 0 : index
    %1 = vector.load %arg2[%c0_1, %c0_2] : memref<32x256xf32, #tpu.memory_space<vmem>>, vector<32x256xf32>
    %cst = arith.constant dense<0.000000e+00> : vector<8x256xf32>
    %2 = tpu.matmul %0, %1, %cst {dimension_numbers = #tpu.dot_dimension_numbers<[1], [0], [0], [1], [0, 0, 1, 1], [], []>} : vector<8x32xf32>, vector<32x256xf32>, vector<8x256xf32> -> vector<8x256xf32>
    %c0_3 = arith.constant 0 : index
    %c0_4 = arith.constant 0 : index
    %3 = vector.load %arg3[%c0_3, %c0_4] : memref<1x256xf32, #tpu.memory_space<vmem>>, vector<1x256xf32>
    %4 = vector.broadcast %3 : vector<1x256xf32> to vector<8x256xf32>
    %5 = arith.addf %2, %4 : vector<8x256xf32>
    %cst_5 = arith.constant 0.000000e+00 : f32
    %6 = vector.broadcast %cst_5 : f32 to vector<8x256xf32>
    %7 = arith.maximumf %5, %6 : vector<8x256xf32>
    %c0_6 = arith.constant 0 : index
    %c0_7 = arith.constant 0 : index
    %8 = vector.load %arg4[%c0_6, %c0_7] : memref<256x19xf32, #tpu.memory_space<vmem>>, vector<256x19xf32>
    %cst_8 = arith.constant dense<0.000000e+00> : vector<8x19xf32>
    %9 = tpu.matmul %7, %8, %cst_8 {dimension_numbers = #tpu.dot_dimension_numbers<[1], [0], [0], [1], [0, 0, 1, 1], [], []>} : vector<8x256xf32>, vector<256x19xf32>, vector<8x19xf32> -> vector<8x19xf32>
    %c0_9 = arith.constant 0 : index
    %c0_10 = arith.constant 0 : index
    %10 = vector.load %arg5[%c0_9, %c0_10] : memref<1x19xf32, #tpu.memory_space<vmem>>, vector<1x19xf32>
    %11 = vector.broadcast %10 : vector<1x19xf32> to vector<8x19xf32>
    %12 = arith.addf %9, %11 : vector<8x19xf32>
    %c0_11 = arith.constant 0 : index
    %c0_12 = arith.constant 0 : index
    %13 = vector.load %arg6[%c0_11, %c0_12] : memref<8x19xf32, #tpu.memory_space<vmem>>, vector<8x19xf32>
    %cst_13 = arith.constant 0.000000e+00 : f32
    %14 = vector.broadcast %cst_13 : f32 to vector<8x19xf32>
    %15 = arith.cmpf one, %13, %14 : vector<8x19xf32>
    %cst_14 = arith.constant -1.000000e+10 : f32
    %16 = vector.broadcast %cst_14 : f32 to vector<8x19xf32>
    %17 = arith.select %15, %12, %16 : vector<8x19xi1>, vector<8x19xf32>
    %c0_15 = arith.constant 0 : index
    %c0_16 = arith.constant 0 : index
    %18 = vector.load %arg7[%c0_15, %c0_16] : memref<8x19xf32, #tpu.memory_space<vmem>>, vector<8x19xf32>
    tpu.vector_store %arg7[%c0_15, %c0_16], %17 {strides = array<i32>} : memref<8x19xf32, #tpu.memory_space<vmem>>, vector<8x19xf32>,
    return
  }
  func.func @transform_0(%arg0: i32) -> (i32, i32) {
    %c0_i32 = arith.constant 0 : i32
    %c0_i32_0 = arith.constant 0 : i32
    return %arg0, %c0_i32 : i32, i32
  }
  func.func @transform_1(%arg0: i32) -> (i32, i32) {
    %c0_i32 = arith.constant 0 : i32
    %c0_i32_0 = arith.constant 0 : i32
    %c0_i32_1 = arith.constant 0 : i32
    return %c0_i32, %c0_i32_0 : i32, i32
  }
  func.func @transform_2(%arg0: i32) -> (i32, i32) {
    %c0_i32 = arith.constant 0 : i32
    %c0_i32_0 = arith.constant 0 : i32
    %c0_i32_1 = arith.constant 0 : i32
    return %c0_i32, %c0_i32_0 : i32, i32
  }
  func.func @transform_3(%arg0: i32) -> (i32, i32) {
    %c0_i32 = arith.constant 0 : i32
    %c0_i32_0 = arith.constant 0 : i32
    %c0_i32_1 = arith.constant 0 : i32
    return %c0_i32, %c0_i32_0 : i32, i32
  }
  func.func @transform_4(%arg0: i32) -> (i32, i32) {
    %c0_i32 = arith.constant 0 : i32
    %c0_i32_0 = arith.constant 0 : i32
    %c0_i32_1 = arith.constant 0 : i32
    return %c0_i32, %c0_i32_0 : i32, i32
  }
  func.func @transform_5(%arg0: i32) -> (i32, i32) {
    %c0_i32 = arith.constant 0 : i32
    %c0_i32_0 = arith.constant 0 : i32
    return %arg0, %c0_i32 : i32, i32
  }
  func.func @transform_6(%arg0: i32) -> (i32, i32) {
    %c0_i32 = arith.constant 0 : i32
    %c0_i32_0 = arith.constant 0 : i32
    return %arg0, %c0_i32 : i32, i32
  }
}

</mosaic_0001>

<bundles_post_ra>
// kernel: tpu_custom_call.1
= control target key start
LH: loop header
LB: loop body
LE: loop exit
PB: predicated region body
PF: predicated region fallthrough
CT: control target
= control target key end

     0   :  { %vm39_vm0 = vcmask 261120   ;;  %s383_s0 = inlined_call_operand.vmem [shape: f32[8,32], index: 0, kind: input, shape index: {}]   ;;  %s384_s1 = inlined_call_operand.vmem [shape: f32[32,256], index: 1, kind: input, shape index: {}]   ;;  %s385_s2 = inlined_call_operand.vmem [shape: f32[1,256], index: 2, kind: input, shape index: {}]   ;;  %s386_s3 = inlined_call_operand.vmem [shape: f32[256,19], index: 3, kind: input, shape index: {}]   ;;  %s387_s4 = inlined_call_operand.vmem [shape: f32[1,19], index: 4, kind: input, shape index: {}]   ;;  %s388_s5 = inlined_call_operand.vmem [shape: f32[8,19], index: 5, kind: input, shape index: {}]   ;;  %s389_s6 = inlined_call_operand.hbm [shape: f32[8,19], index: 6, kind: output, shape index: {}]  }
   0x1   :  { %v31_v0 = vld [vmem:[%s384_s1 + $0x30] sm:$0xff]  ;;  %v29_v1 = vld [vmem:[%s384_s1 + $0x20] sm:$0xff]  ;;  %v32_v2 = vld [vmem:[%s384_s1 + $0x38] sm:$0xff] }
   0x2   :  { %55 = vmatpush.msra.mxu0 %v31_v0  ;;  %75 = vmatpush.msra.mxu1 %v32_v2  ;;  %v30_v3 = vld [vmem:[%s384_s1 + $0x28] sm:$0xff]  ;;  %v27_v4 = vld [vmem:[%s384_s1 + $0x10] sm:$0xff]  ;;  %v28_v5 = vld [vmem:[%s384_s1 + $0x18] sm:$0xff] }
   0x3   :  { %v100_v6 = vld [vmem:[%s386_s3 + $0x78] sm:$0xff]  ;;  %v99_v7 = vld [vmem:[%s386_s3 + $0x70] sm:$0xff]  ;;  %v25_v9 = vld [vmem:[%s384_s1] sm:$0xff] }
   0x4   :  { %56 = vmatpush.msra.mxu0 %v29_v1  ;;  %76 = vmatpush.msra.mxu1 %v30_v3  ;;  %v116_v8 = vld [vmem:[%s386_s3 + $0xf8] sm:$0xff]  ;;  %v26_v10 = vld [vmem:[%s384_s1 + $0x8] sm:$0xff]  ;;  %v115_v11 = vld [vmem:[%s386_s3 + $0xf0] sm:$0xff] }
   0x5   :  { %121 = vmatpush.msra.mxu2 %v100_v6  ;;  %141 = vmatpush.msra.mxu3 %v116_v8  ;;  %v24_v12 = vld [vmem:[%s383_s0] sm:$0xff]  ;;  %v98_v13 = vld [vmem:[%s386_s3 + $0x68] sm:$0xff]  ;;  %v96_v17 = vld [vmem:[%s386_s3 + $0x58] sm:$0xff] }
   0x6   :  { %57 = vmatpush.msra.mxu0 %v27_v4  ;;  %77 = vmatpush.msra.mxu1 %v28_v5  ;;  %v114_v14 = vld [vmem:[%s386_s3 + $0xe8] sm:$0xff]  ;;  %v97_v15 = vld [vmem:[%s386_s3 + $0x60] sm:$0xff]  ;;  %v112_v18 = vld [vmem:[%s386_s3 + $0xd8] sm:$0xff] }
   0x7   :  { %122 = vmatpush.msra.mxu2 %v99_v7  ;;  %142 = vmatpush.msra.mxu3 %v115_v11  ;;  %v113_v16 = vld [vmem:[%s386_s3 + $0xe0] sm:$0xff]  ;;  %v95_v19 = vld [vmem:[%s386_s3 + $0x50] sm:$0xff] }
   0x8   :  { %58 = vmatpush.msra.mxu0 %v25_v9  ;;  %78 = vmatpush.msra.mxu1 %v26_v10  ;;  %v111_v20 = vld [vmem:[%s386_s3 + $0xd0] sm:$0xff] }
   0x9   :  { %182 = vmatmul.msk.f32.vlgmr.msra.gmra.mxu0 %vm39_vm0, %v24_v12  ;;  %183 = vmatmul.msk.f32.vlgmr.msra.gmra.mxu1 %vm39_vm0, %v24_v12 }
   0xa   :  { %123 = vmatpush.msra.mxu2 %v98_v13  ;;  %143 = vmatpush.msra.mxu3 %v114_v14 }
   0xc   :  { %124 = vmatpush.msra.mxu2 %v97_v15  ;;  %144 = vmatpush.msra.mxu3 %v113_v16 }
   0xd   :  { %11 = vsyncpa [#allocation3], 0  ;;  %v94_v21 = vld [vmem:[%s386_s3 + $0x48] sm:$0xff]  ;;  %v93_v23 = vld [vmem:[%s386_s3 + $0x40] sm:$0xff]  ;;  %s173_s9 = sshll.u32 %s389_s6, 4  ;;  %vm164_vm2 = vcmask 154624   ;;  %s174_s9 = int_to_ptr.hbm [resolvable:$true] %s173_s9 }
   0xe   :  { %125 = vmatpush.msra.mxu2 %v96_v17  ;;  %145 = vmatpush.msra.mxu3 %v112_v18  ;;  %v110_v22 = vld [vmem:[%s386_s3 + $0xc8] sm:$0xff]  ;;  %v109_v24 = vld [vmem:[%s386_s3 + $0xc0] sm:$0xff]  ;;  %v92_v25 = vld [vmem:[%s386_s3 + $0x38] sm:$0xff] }
   0xf   :  { %v108_v26 = vld [vmem:[%s386_s3 + $0xb8] sm:$0xff]  ;;  %v91_v27 = vld [vmem:[%s386_s3 + $0x30] sm:$0xff]  ;;  %v90_v29 = vld [vmem:[%s386_s3 + $0x28] sm:$0xff] }
  0x10   :  { %126 = vmatpush.msra.mxu2 %v95_v19  ;;  %146 = vmatpush.msra.mxu3 %v111_v20  ;;  %v107_v28 = vld [vmem:[%s386_s3 + $0xb0] sm:$0xff]  ;;  %v106_v30 = vld [vmem:[%s386_s3 + $0xa8] sm:$0xff]  ;;  %v89_v31 = vld [vmem:[%s386_s3 + $0x20] sm:$0xff] }
  0x11   :  { %v105_v32 = vld [vmem:[%s386_s3 + $0xa0] sm:$0xff]  ;;  %v88_v33 = vld [vmem:[%s386_s3 + $0x18] sm:$0xff]  ;;  %v87_v34 = vld [vmem:[%s386_s3 + $0x10] sm:$0xff] }
  0x12   :  { %127 = vmatpush.msra.mxu2 %v94_v21  ;;  %147 = vmatpush.msra.mxu3 %v110_v22  ;;  %v104_v35 = vld [vmem:[%s386_s3 + $0x98] sm:$0xff]  ;;  %v86_v36 = vld [vmem:[%s386_s3 + $0x8] sm:$0xff]  ;;  %v103_v37 = vld [vmem:[%s386_s3 + $0x90] sm:$0xff] }
  0x13   :  { %v85_v38 = vld [vmem:[%s386_s3] sm:$0xff]  ;;  %v102_v39 = vld [vmem:[%s386_s3 + $0x88] sm:$0xff] }
  0x14   :  { %128 = vmatpush.msra.mxu2 %v93_v23  ;;  %148 = vmatpush.msra.mxu3 %v109_v24  ;;  %v101_v40 = vld [vmem:[%s386_s3 + $0x80] sm:$0xff] }
  0x15   :  { %v33_v41 = vld [vmem:[%s385_s2] sm:$0x3]  ;;  %s212_s2 = smov [#allocation2]  }
  0x16   :  { %129 = vmatpush.msra.mxu2 %v92_v25  ;;  %149 = vmatpush.msra.mxu3 %v108_v26  ;;  %v35_v42 = vperm.slane %v33_v41, 0  ;;  %v36_v43 = vperm.slane %v33_v41, 1  ;;  %v185_v50 = vld [vmem:[%s387_s4] ss:$0 sm:$0xff]  ;;  %s171_s30 = sshll.u32 %s212_s2, 4  ;;  %s172_s30 = int_to_ptr.vmem [resolvable:$true] %s171_s30 }
  0x17   :  { %v161_v51 = vld [vmem:[%s388_s5] sm:$0xff] }
  0x18   :  { %130 = vmatpush.msra.mxu2 %v91_v27  ;;  %150 = vmatpush.msra.mxu3 %v107_v28  ;;  %vm162_vm1 = vcmp.ne.f32.partialorder %v161_v51, 0.0 }
  0x1a   :  { %131 = vmatpush.msra.mxu2 %v90_v29  ;;  %151 = vmatpush.msra.mxu3 %v106_v30 }
  0x1c   :  { %132 = vmatpush.msra.mxu2 %v89_v31  ;;  %152 = vmatpush.msra.mxu3 %v105_v32 }
  0x1e   :  { %133 = vmatpush.msra.mxu2 %v88_v33  ;;  %153 = vmatpush.msra.mxu3 %v104_v35 }
  0x20   :  { %134 = vmatpush.msra.mxu2 %v87_v34  ;;  %154 = vmatpush.msra.mxu3 %v103_v37 }
  0x22   :  { %135 = vmatpush.msra.mxu2 %v86_v36  ;;  %155 = vmatpush.msra.mxu3 %v102_v39 }
  0x24   :  { %136 = vmatpush.msra.mxu2 %v85_v38  ;;  %156 = vmatpush.msra.mxu3 %v101_v40 }
  0x86   :  { %v60_v44 = vpop.f32.mrf.mxu0  ;;  %v80_v45 = vpop.f32.mrf.mxu1 }
  0x87   :  { %v61_v46 = vadd.f32 %v60_v44, %v35_v42  ;;  %v81_v47 = vadd.f32 %v80_v45, %v36_v43 }
  0x89   :  { %v83_v48 = vmax.f32 %v61_v46, 0.0  ;;  %v84_v49 = vmax.f32 %v81_v47, 0.0 }
  0x8b   :  { %137 = vmatmul.f32.vlgmr.msra.gmra.mxu2 %v83_v48  ;;  %157 = vmatmul.f32.vlgmr.msra.gmra.mxu3 %v84_v49 }
 0x10e   :  { %v138_v52 = vpop.f32.mrf.mxu2  ;;  %v158_v53 = vpop.f32.mrf.mxu3 }
 0x10f   :  { %v139_v54 = vadd.f32 %v185_v50, %v138_v52 }
 0x111   :  { %v159_v55 = vadd.f32 %v158_v53, %v139_v54 }
 0x113   :  { %v163_v56 = vsel %vm162_vm1, %v159_v55, -1e+10 }
 0x114   :  { %165 = vst.msk [vmem:[#allocation2] sm:$0xff] %vm164_vm2, %v163_v56 }
 0x115   :  { %176 = dma.vmem_to_hbm [thread:$0]  %s172_s30, 128, %s174_s9, [#allocation3]  }
 0x116   :  { %210 = dma.done.wait [#allocation3], 128  }
 0x117   :  { %211 = vsyncadd [#allocation3], 4294967168 }
 0x118   :  { %181 = vsyncpa [#allocation3], 1 }

</bundles_post_ra>
